<compile_context>
chip_gen: v7x
topology: tpu7x:2x2x1
jax: 0.10.0
libtpu: 0.0.40
codegen_flags: <defaults>
</compile_context>

<pallas_src>
from functools import partial

import jax
import jax.numpy as jnp
from jax.experimental import pallas as pl
from jax.experimental.pallas import tpu as pltpu

# ----- true (unpadded) network dimensions, from the PyTorch module -----
D_IN, D_H1, D_H2, D_OUT = 4, 8, 4, 2

# Batch columns (lanes) per grid step for large batches.
# Per-buffer VMEM: x block (4, T) f32 = 1 MiB, out block (2, T) = 0.5 MiB;
# with double-buffering plus in-register activations this stays well under
# v5e's 16 MiB default scoped VMEM (v6e/v7x have 32 MiB scoped defaults).
TBL = 65536


def _mlp_kernel(x_ref, w1_ref, b1_ref, w2_ref, b2_ref, w3_ref, b3_ref, o_ref):
    """Fused W3@relu(W2@relu(W1@x+b1)+b2)+b3 on one (D_IN, T) batch tile.

    All arrays are feature-major: features on sublanes, batch on lanes, so the
    wide T axis is lane-dense for every load, VPU op, and store.
    """
    x = x_ref[...]                                                  # (4, T)
    h1 = jnp.dot(w1_ref[...], x, preferred_element_type=jnp.float32) + b1_ref[...]
    h1 = jnp.maximum(h1, 0.0)                                       # (8, T)
    h2 = jnp.dot(w2_ref[...], h1, preferred_element_type=jnp.float32) + b2_ref[...]
    h2 = jnp.maximum(h2, 0.0)                                       # (4, T)
    out = jnp.dot(w3_ref[...], h2, preferred_element_type=jnp.float32) + b3_ref[...]
    o_ref[...] = out.astype(o_ref.dtype)                            # (2, T)


def prepare_params(params):
    """One-time packing: keep (out, in) PyTorch layout, biases as (out, 1)."""
    f32 = jnp.float32
    return (
        params["W1"].astype(f32), params["b1"].astype(f32).reshape(D_H1, 1),
        params["W2"].astype(f32), params["b2"].astype(f32).reshape(D_H2, 1),
        params["W3"].astype(f32), params["b3"].astype(f32).reshape(D_OUT, 1),
    )


@partial(jax.jit, static_argnames=("tile_batch",))
def fractional_network_forward(x, packed, *, tile_batch=TBL):
    """x: (batch, 4) float32.  packed: output of prepare_params."""
    w1, b1, w2, b2, w3, b3 = packed
    batch, d_in = x.shape
    assert d_in == D_IN

    # Feature-major layout: batch on the 128-lane axis (layout plumbing only).
    x_t = x.astype(jnp.float32).T                                   # (4, batch)

    if batch <= tile_batch:
        # Tiny/medium batch: one whole-array block (block_shape == array shape,
        # so no (8,128) divisibility requirement and no padding passes at all).
        tbl, pb, grid = batch, batch, (1,)
        x_in = x_t
    else:
        # Large batch: tile the lane axis; pad the tail up to a tile multiple.
        # (A pl.when-guarded masked store on the last tile would avoid this pad
        #  pass, but accepting the pad keeps the kernel simple and correct.)
        tbl = tile_batch
        pb = ((batch + tbl - 1) // tbl) * tbl
        x_in = x_t if pb == batch else jnp.pad(x_t, ((0, 0), (0, pb - batch)))
        grid = (pb // tbl,)

    const2d = lambda i: (0, 0)  # weights/biases stay VMEM-resident across steps
    out_t = pl.pallas_call(
        _mlp_kernel,
        out_shape=jax.ShapeDtypeStruct((D_OUT, pb), jnp.float32),
        grid=grid,
        in_specs=[
            pl.BlockSpec((D_IN, tbl), lambda i: (0, i)),    # batch tile marches
            pl.BlockSpec(w1.shape, const2d), pl.BlockSpec(b1.shape, const2d),
            pl.BlockSpec(w2.shape, const2d), pl.BlockSpec(b2.shape, const2d),
            pl.BlockSpec(w3.shape, const2d), pl.BlockSpec(b3.shape, const2d),
        ],
        out_specs=pl.BlockSpec((D_OUT, tbl), lambda i: (0, i)),
        compiler_params=pltpu.CompilerParams(
            dimension_semantics=("parallel",)),
    )(x_in, w1, b1, w2, b2, w3, b3)

    # (2, padded_batch) -> (batch, 2): only D_OUT=2 rows, negligible traffic.
    return out_t[:, :batch].T


def init_params(key):
    """Deterministic init matching the PyTorch module: W ~ 0.1*randn, b = 0."""
    k1, k2, k3 = jax.random.split(key, 3)
    return {
        "W1": 0.1 * jax.random.normal(k1, (D_H1, D_IN), dtype=jnp.float32),
        "b1": jnp.zeros((D_H1,), dtype=jnp.float32),
        "W2": 0.1 * jax.random.normal(k2, (D_H2, D_H1), dtype=jnp.float32),
        "b2": jnp.zeros((D_H2,), dtype=jnp.float32),
        "W3": 0.1 * jax.random.normal(k3, (D_OUT, D_H2), dtype=jnp.float32),
        "b3": jnp.zeros((D_OUT,), dtype=jnp.float32),
    }


def _reference_forward(x, p):
    """Pure-JAX reference of the PyTorch forward (for correctness check)."""
    h1 = jnp.maximum(x @ p["W1"].T + p["b1"], 0.0)
    h2 = jnp.maximum(h1 @ p["W2"].T + p["b2"], 0.0)
    return h2 @ p["W3"].T + p["b3"]


if __name__ == "__main__":
    key = jax.random.PRNGKey(0)
    pkey, xkey, xkey2 = jax.random.split(key, 3)
    params = init_params(pkey)
    packed = prepare_params(params)   # packed once, reused per call

    # Small batch: single whole-array block path.
    batch = 2
    x = jax.random.normal(xkey, (batch, D_IN), dtype=jnp.float32)
    out = jax.block_until_ready(fractional_network_forward(x, packed))
    ref = _reference_forward(x, params)
    assert out.shape == (batch, D_OUT), out.shape
    assert jnp.allclose(out, ref, atol=1e-5, rtol=1e-5), (out, ref)

    # Larger, non-tile-multiple batch: exercises the tiled grid (>1 step,
    # "parallel" over TensorCores) and the padded-tail path.
    xbig = jax.random.normal(xkey2, (1000, D_IN), dtype=jnp.float32)
    obig = jax.block_until_ready(
        fractional_network_forward(xbig, packed, tile_batch=256))
    assert obig.shape == (1000, D_OUT), obig.shape
    assert jnp.allclose(obig, _reference_forward(xbig, params),
                        atol=1e-5, rtol=1e-5)

    print("KERNEL_OK")
</pallas_src>

<mosaic_0001>
module attributes {stable_mosaic.version = 11 : i64} {
  func.func @_mlp_kernel(%arg0: i32, %arg1: memref<4x2xf32, #tpu.memory_space<vmem>>, %arg2: memref<8x4xf32, #tpu.memory_space<vmem>>, %arg3: memref<8x1xf32, #tpu.memory_space<vmem>>, %arg4: memref<4x8xf32, #tpu.memory_space<vmem>>, %arg5: memref<4x1xf32, #tpu.memory_space<vmem>>, %arg6: memref<2x4xf32, #tpu.memory_space<vmem>>, %arg7: memref<2x1xf32, #tpu.memory_space<vmem>>, %arg8: memref<2x2xf32, #tpu.memory_space<vmem>>) attributes {dimension_semantics = [#tpu.dimension_semantics<parallel>], iteration_bounds = array<i64: 1>, scalar_prefetch = 0 : i64, scratch_operands = 0 : i64, tpu.core_type = #tpu.core_type<tc>, window_params = [{transform_indices = @transform_0, window_bounds = array<i64: 4, 2>}, {pipeline_mode = #tpu.pipeline_mode<synchronous>, transform_indices = @transform_1, window_bounds = array<i64: 8, 4>}, {pipeline_mode = #tpu.pipeline_mode<synchronous>, transform_indices = @transform_2, window_bounds = array<i64: 8, 1>}, {pipeline_mode = #tpu.pipeline_mode<synchronous>, transform_indices = @transform_3, window_bounds = array<i64: 4, 8>}, {pipeline_mode = #tpu.pipeline_mode<synchronous>, transform_indices = @transform_4, window_bounds = array<i64: 4, 1>}, {pipeline_mode = #tpu.pipeline_mode<synchronous>, transform_indices = @transform_5, window_bounds = array<i64: 2, 4>}, {pipeline_mode = #tpu.pipeline_mode<synchronous>, transform_indices = @transform_6, window_bounds = array<i64: 2, 1>}, {transform_indices = @transform_7, window_bounds = array<i64: 2, 2>}]} {
    %c0 = arith.constant 0 : index
    %c0_0 = arith.constant 0 : index
    %0 = vector.load %arg1[%c0, %c0_0] : memref<4x2xf32, #tpu.memory_space<vmem>>, vector<4x2xf32>
    %c0_1 = arith.constant 0 : index
    %c0_2 = arith.constant 0 : index
    %1 = vector.load %arg2[%c0_1, %c0_2] : memref<8x4xf32, #tpu.memory_space<vmem>>, vector<8x4xf32>
    %cst = arith.constant dense<0.000000e+00> : vector<8x2xf32>
    %2 = tpu.matmul %1, %0, %cst {dimension_numbers = #tpu.dot_dimension_numbers<[1], [0], [0], [1], [0, 0, 1, 1], [], []>} : vector<8x4xf32>, vector<4x2xf32>, vector<8x2xf32> -> vector<8x2xf32>
    %c0_3 = arith.constant 0 : index
    %c0_4 = arith.constant 0 : index
    %3 = vector.load %arg3[%c0_3, %c0_4] : memref<8x1xf32, #tpu.memory_space<vmem>>, vector<8x1xf32>
    %4 = vector.broadcast %3 : vector<8x1xf32> to vector<8x2xf32>
    %5 = arith.addf %2, %4 : vector<8x2xf32>
    %cst_5 = arith.constant 0.000000e+00 : f32
    %6 = vector.broadcast %cst_5 : f32 to vector<8x2xf32>
    %7 = arith.maximumf %5, %6 : vector<8x2xf32>
    %c0_6 = arith.constant 0 : index
    %c0_7 = arith.constant 0 : index
    %8 = vector.load %arg4[%c0_6, %c0_7] : memref<4x8xf32, #tpu.memory_space<vmem>>, vector<4x8xf32>
    %cst_8 = arith.constant dense<0.000000e+00> : vector<4x2xf32>
    %9 = tpu.matmul %8, %7, %cst_8 {dimension_numbers = #tpu.dot_dimension_numbers<[1], [0], [0], [1], [0, 0, 1, 1], [], []>} : vector<4x8xf32>, vector<8x2xf32>, vector<4x2xf32> -> vector<4x2xf32>
    %c0_9 = arith.constant 0 : index
    %c0_10 = arith.constant 0 : index
    %10 = vector.load %arg5[%c0_9, %c0_10] : memref<4x1xf32, #tpu.memory_space<vmem>>, vector<4x1xf32>
    %11 = vector.broadcast %10 : vector<4x1xf32> to vector<4x2xf32>
    %12 = arith.addf %9, %11 : vector<4x2xf32>
    %cst_11 = arith.constant 0.000000e+00 : f32
    %13 = vector.broadcast %cst_11 : f32 to vector<4x2xf32>
    %14 = arith.maximumf %12, %13 : vector<4x2xf32>
    %c0_12 = arith.constant 0 : index
    %c0_13 = arith.constant 0 : index
    %15 = vector.load %arg6[%c0_12, %c0_13] : memref<2x4xf32, #tpu.memory_space<vmem>>, vector<2x4xf32>
    %cst_14 = arith.constant dense<0.000000e+00> : vector<2x2xf32>
    %16 = tpu.matmul %15, %14, %cst_14 {dimension_numbers = #tpu.dot_dimension_numbers<[1], [0], [0], [1], [0, 0, 1, 1], [], []>} : vector<2x4xf32>, vector<4x2xf32>, vector<2x2xf32> -> vector<2x2xf32>
    %c0_15 = arith.constant 0 : index
    %c0_16 = arith.constant 0 : index
    %17 = vector.load %arg7[%c0_15, %c0_16] : memref<2x1xf32, #tpu.memory_space<vmem>>, vector<2x1xf32>
    %18 = vector.broadcast %17 : vector<2x1xf32> to vector<2x2xf32>
    %19 = arith.addf %16, %18 : vector<2x2xf32>
    %c0_17 = arith.constant 0 : index
    %c0_18 = arith.constant 0 : index
    %20 = vector.load %arg8[%c0_17, %c0_18] : memref<2x2xf32, #tpu.memory_space<vmem>>, vector<2x2xf32>
    tpu.vector_store %arg8[%c0_17, %c0_18], %19 {strides = array<i32>} : memref<2x2xf32, #tpu.memory_space<vmem>>, vector<2x2xf32>,
    return
  }
  func.func @transform_0(%arg0: i32) -> (i32, i32) {
    %c0_i32 = arith.constant 0 : i32
    %c0_i32_0 = arith.constant 0 : i32
    return %c0_i32, %arg0 : i32, i32
  }
  func.func @transform_1(%arg0: i32) -> (i32, i32) {
    %c0_i32 = arith.constant 0 : i32
    %c0_i32_0 = arith.constant 0 : i32
    %c0_i32_1 = arith.constant 0 : i32
    return %c0_i32, %c0_i32_0 : i32, i32
  }
  func.func @transform_2(%arg0: i32) -> (i32, i32) {
    %c0_i32 = arith.constant 0 : i32
    %c0_i32_0 = arith.constant 0 : i32
    %c0_i32_1 = arith.constant 0 : i32
    return %c0_i32, %c0_i32_0 : i32, i32
  }
  func.func @transform_3(%arg0: i32) -> (i32, i32) {
    %c0_i32 = arith.constant 0 : i32
    %c0_i32_0 = arith.constant 0 : i32
    %c0_i32_1 = arith.constant 0 : i32
    return %c0_i32, %c0_i32_0 : i32, i32
  }
  func.func @transform_4(%arg0: i32) -> (i32, i32) {
    %c0_i32 = arith.constant 0 : i32
    %c0_i32_0 = arith.constant 0 : i32
    %c0_i32_1 = arith.constant 0 : i32
    return %c0_i32, %c0_i32_0 : i32, i32
  }
  func.func @transform_5(%arg0: i32) -> (i32, i32) {
    %c0_i32 = arith.constant 0 : i32
    %c0_i32_0 = arith.constant 0 : i32
    %c0_i32_1 = arith.constant 0 : i32
    return %c0_i32, %c0_i32_0 : i32, i32
  }
  func.func @transform_6(%arg0: i32) -> (i32, i32) {
    %c0_i32 = arith.constant 0 : i32
    %c0_i32_0 = arith.constant 0 : i32
    %c0_i32_1 = arith.constant 0 : i32
    return %c0_i32, %c0_i32_0 : i32, i32
  }
  func.func @transform_7(%arg0: i32) -> (i32, i32) {
    %c0_i32 = arith.constant 0 : i32
    %c0_i32_0 = arith.constant 0 : i32
    return %c0_i32, %arg0 : i32, i32
  }
}

</mosaic_0001>

<bundles_post_ra>
// kernel: fractional_network_forward.1
= control target key start
LH: loop header
LB: loop body
LE: loop exit
PB: predicated region body
PF: predicated region fallthrough
CT: control target
= control target key end

     0   :  { %vm38_vm0 = vcmask 1043456   ;;  %vm34_vm1 = vcmask 31744   ;;  %v315_v0 = vmov 0.0   ;;  %vm316_vm2 = vmmov 0   ;;  %s386_s0 = inlined_call_operand.vmem [shape: f32[4,2], index: 0, kind: input, shape index: {}]   ;;  %s387_s1 = inlined_call_operand.vmem [shape: f32[8,4], index: 1, kind: input, shape index: {}]   ;;  %s388_s2 = inlined_call_operand.vmem [shape: f32[8,1], index: 2, kind: input, shape index: {}]   ;;  %s389_s4 = inlined_call_operand.vmem [shape: f32[4,1], index: 4, kind: input, shape index: {}]   ;;  %s390_s3 = inlined_call_operand.vmem [shape: f32[4,8], index: 3, kind: input, shape index: {}]   ;;  %s391_s6 = inlined_call_operand.vmem [shape: f32[2,1], index: 6, kind: input, shape index: {}]   ;;  %s392_s5 = inlined_call_operand.vmem [shape: f32[2,4], index: 5, kind: input, shape index: {}]   ;;  %s393_s7 = inlined_call_operand.vmem [shape: f32[2,2], index: 7, kind: output, shape index: {}]  }
   0x1   :  { %295 = vmatprep.subr.mxu0 %v315_v0  ;;  %v26_v1 = vld [vmem:[%s386_s0] sm:$0xf]  ;;  %297 = vmatprep.mubr.msk.f32.mxu0 %vm316_vm2, %v315_v0  ;;  %v317_v4 = vmov 0   ;;  %vm120_vm3 = vcmask 64512   ;;  %vm278_vm4 = vcmask 9216  }
   0x2   :  { %v27_v2 = vld [vmem:[%s387_s1] sm:$0xff]  ;;  %296 = vmatpush3.msk.msra.mxu0 %vm38_vm0, %v26_v1  ;;  %313 = vset.pattern.permute.xlu0 %v317_v4 }
   0x3   :  { %v28_v3 = vld [vmem:[%s388_s2] sm:$0xff]  ;;  %298 = vmatmul.mubr.msk.f32.vlgmr.msra.gmra.mrb[0].mxu0 %vm34_vm1, %v27_v2  ;;  %300 = vmatprep.subr.mxu1 %v315_v0 }
   0x4   :  { %31 = vperm.xlu0 %313, %v28_v3   ;;  %v114_v5 = vld [vmem:[%s389_s4] sm:$0xf]  ;;  %302 = vmatprep.mubr.msk.f32.mxu1 %vm316_vm2, %v315_v0 }
   0x5   :  { %305 = vmatprep.subr.mxu0 %v315_v0  ;;  %307 = vmatprep.mubr.msk.f32.mxu0 %vm316_vm2, %v315_v0  ;;  %v113_v11 = vld [vmem:[%s390_s3] sm:$0xf] }
   0x6   :  { %314 = vset.pattern.permute.xlu1 %v317_v4  ;;  %v196_v12 = vld [vmem:[%s391_s6] sm:$0x3] }
   0x7   :  { %199 = vperm.xlu1 %314, %v196_v12   ;;  %v195_v18 = vld [vmem:[%s392_s5] sm:$0x3] }
   0x8   :  { %117 = vperm.xlu0 %313, %v114_v5  }
  0x83   :  { %v32_v6 = vpop.permute.xlu0 %31 }
  0x86   :  { %v200_v19 = vpop.permute.xlu1 %199 }
  0x87   :  { %v118_v13 = vpop.permute.xlu0 %117 }
  0xd6   :  { %v108_v7 = vpop.f32.mrb[0].mxu0 }
  0xd7   :  { %v109_v8 = vadd.f32 %v108_v7, %v32_v6  ;;  %v299_v9 = vpop.f32.mrb[1].mxu0 }
  0xd9   :  { %v112_v10 = vmax.f32 %v109_v8, 0.0 }
  0xdb   :  { %301 = vmatpush3.msra.mxu1 %v112_v10 }
  0xdc   :  { %303 = vmatmul.mubr.msk.f32.vlgmr.msra.gmra.mrb[0].mxu1 %vm120_vm3, %v113_v11 }
 0x1af   :  { %v190_v14 = vpop.f32.mrb[0].mxu1 }
 0x1b0   :  { %v191_v15 = vadd.f32 %v190_v14, %v118_v13  ;;  %v304_v16 = vpop.f32.mrb[1].mxu1 }
 0x1b2   :  { %v194_v17 = vmax.f32 %v191_v15, 0.0 }
 0x1b4   :  { %306 = vmatpush3.msk.msra.mxu0 %vm38_vm0, %v194_v17 }
 0x1b5   :  { %308 = vmatmul.mubr.msk.f32.vlgmr.msra.gmra.mrb[2].mxu0 %vm34_vm1, %v195_v18 }
 0x288   :  { %v274_v20 = vpop.f32.mrb[2].mxu0 }
 0x289   :  { %v275_v21 = vadd.f32 %v274_v20, %v200_v19  ;;  %v309_v22 = vpop.f32.mrb[3].mxu0 }
 0x28b   :  { %279 = vst.msk [vmem:[%s393_s7] sm:$0x3] %vm278_vm4, %v275_v21 }

</bundles_post_ra>
